<compile_context>
chip_gen: v5e
topology: v5e:2x2
jax: 0.10.0
libtpu: 0.0.40
codegen_flags: <defaults>
</compile_context>

<pallas_src>
import functools

import jax
import jax.numpy as jnp
from jax.experimental import pallas as pl
from jax.experimental.pallas import tpu as pltpu


def _grouped_conv1x1_kernel(x_ref, w_ref, b_ref, o_ref, *, num_inputs):
    # x_ref: (BB, C, M, TL)  input slab (BB batch rows, one L tile)
    # w_ref: (C, M)          per-group weights (kernel_size == 1 squeezed away)
    # b_ref: (C, 1)          per-output-channel bias
    # o_ref: (BB, C, TL)     output slab
    w = w_ref[...]                                        # (C, M), tiny

    # Statically unrolled FMA over the small M contraction -> pure VPU work on
    # lane-dense (BB, C, TL) tiles; avoids a (C, M, TL) broadcast-multiply
    # intermediate and any cross-sublane reduction.
    acc = x_ref[:, :, 0, :] * w[None, :, 0:1]             # (BB, C, TL)
    for m in range(1, num_inputs):
        acc = acc + x_ref[:, :, m, :] * w[None, :, m:m + 1]

    acc = acc + b_ref[...][None]                          # (1, C, 1) broadcast
    o_ref[...] = jnp.clip(acc, 0.0, 1.0)                  # torch.clamp(x, 0, 1)


def _round_up(v, m):
    return ((v + m - 1) // m) * m


def ensemble_model_forward(x, weight, bias, num_classes, num_inputs,
                           *, lane_tile=1024, step_budget_bytes=8 << 20):
    """x: (B, C*M, L) float32; weight: (C, M, 1); bias: (C,).

    Returns (B, C*L) float32, matching the PyTorch Model.forward.
    """
    B, CM, L = x.shape
    C, M = num_classes, num_inputs
    assert CM == C * M, f"expected {C * M} input channels, got {CM}"

    x4 = x.reshape(B, C, M, L)          # contiguous split -> free reshape
    w2 = weight.reshape(C, M)           # kernel_size == 1
    b2 = bias.reshape(C, 1)

    # Lane tile: full L when small, otherwise a 1024-lane (multiple of 128) tile.
    TL = L if L <= lane_tile else lane_tile

    # VMEM-per-batch-row with (sublane=8, lane=128) tiling/padding applied to the
    # trailing (M, TL) input tiles and (C, TL) output tiles, times 2 for the
    # double-buffered pipeline.  Fold as many batch rows per grid step as fit.
    tl_pad = _round_up(TL, 128)
    in_row_bytes = C * _round_up(M, 8) * tl_pad * 4
    out_row_bytes = _round_up(C, 8) * tl_pad * 4
    per_row_bytes = 2 * (in_row_bytes + out_row_bytes)
    BB = max(1, min(B, step_budget_bytes // max(per_row_bytes, 1)))

    grid = (pl.cdiv(B, BB), pl.cdiv(L, TL))

    kernel = functools.partial(_grouped_conv1x1_kernel, num_inputs=M)

    out = pl.pallas_call(
        kernel,
        out_shape=jax.ShapeDtypeStruct((B, C, L), jnp.float32),
        grid_spec=pltpu.PrefetchScalarGridSpec(
            num_scalar_prefetch=0,
            grid=grid,
            in_specs=[
                # (BB batch rows) x (all channels) x (all M) x (one L tile)
                pl.BlockSpec((BB, C, M, TL), lambda i, j: (i, 0, 0, j)),
                # weights / bias are grid-invariant -> DMA'd exactly once
                pl.BlockSpec((C, M), lambda i, j: (0, 0)),
                pl.BlockSpec((C, 1), lambda i, j: (0, 0)),
            ],
            out_specs=pl.BlockSpec((BB, C, TL), lambda i, j: (i, 0, j)),
        ),
        compiler_params=pltpu.CompilerParams(
            dimension_semantics=("parallel", "parallel")),
    )(x4, w2, b2)

    return out.reshape(B, C * L)        # x.view(x.shape[0], -1)


def _reference(x, weight, bias, num_classes, num_inputs):
    B, _, L = x.shape
    x4 = x.reshape(B, num_classes, num_inputs, L)
    ref = jnp.einsum("bcml,cm->bcl", x4, weight[..., 0]) + bias[None, :, None]
    return jnp.clip(ref, 0.0, 1.0).reshape(B, -1)


if __name__ == "__main__":
    # Config consistent with the module:
    #   config.model.num_classes = 4, len(config.data.inputs) = 3
    num_classes = 4
    num_inputs = 3

    key = jax.random.PRNGKey(0)
    kx, kw, kb = jax.random.split(key, 3)

    weight = jax.random.normal(kw, (num_classes, num_inputs, 1),
                               dtype=jnp.float32) * 0.5
    bias = jax.random.normal(kb, (num_classes,), dtype=jnp.float32) * 0.1

    # --- tiny config (single grid step, TL == L) -----------------------------
    B, L = 2, 16
    x = jax.random.normal(kx, (B, num_classes * num_inputs, L),
                          dtype=jnp.float32)
    y = jax.block_until_ready(
        ensemble_model_forward(x, weight, bias, num_classes, num_inputs))
    ref = _reference(x, weight, bias, num_classes, num_inputs)
    assert y.shape == (B, num_classes * L)
    assert jnp.allclose(y, ref, atol=1e-5, rtol=1e-5), "tiny-config mismatch"

    # --- larger L (exercises the 1024-lane tiled / multi-step path) ----------
    B2, L2 = 3, 2048
    kx2 = jax.random.fold_in(kx, 1)
    x2 = jax.random.normal(kx2, (B2, num_classes * num_inputs, L2),
                           dtype=jnp.float32)
    y2 = jax.block_until_ready(
        ensemble_model_forward(x2, weight, bias, num_classes, num_inputs))
    ref2 = _reference(x2, weight, bias, num_classes, num_inputs)
    assert y2.shape == (B2, num_classes * L2)
    assert jnp.allclose(y2, ref2, atol=1e-5, rtol=1e-5), "tiled-path mismatch"

    print("KERNEL_OK")
</pallas_src>

<mosaic_0001>
module attributes {stable_mosaic.version = 11 : i64} {
  func.func @_grouped_conv1x1_kernel(%arg0: i32, %arg1: i32, %arg2: memref<2x4x3x16xf32, #tpu.memory_space<vmem>>, %arg3: memref<4x3xf32, #tpu.memory_space<vmem>>, %arg4: memref<4x1xf32, #tpu.memory_space<vmem>>, %arg5: memref<2x4x16xf32, #tpu.memory_space<vmem>>) attributes {dimension_semantics = [#tpu.dimension_semantics<parallel>, #tpu.dimension_semantics<parallel>], iteration_bounds = array<i64: 1, 1>, scalar_prefetch = 0 : i64, scratch_operands = 0 : i64, tpu.core_type = #tpu.core_type<tc>, window_params = [{transform_indices = @transform_0, window_bounds = array<i64: 2, 4, 3, 16>}, {pipeline_mode = #tpu.pipeline_mode<synchronous>, transform_indices = @transform_1, window_bounds = array<i64: 4, 3>}, {pipeline_mode = #tpu.pipeline_mode<synchronous>, transform_indices = @transform_2, window_bounds = array<i64: 4, 1>}, {transform_indices = @transform_3, window_bounds = array<i64: 2, 4, 16>}]} {
    %c0 = arith.constant 0 : index
    %c0_0 = arith.constant 0 : index
    %0 = vector.load %arg3[%c0, %c0_0] : memref<4x3xf32, #tpu.memory_space<vmem>>, vector<4x3xf32>
    %c0_1 = arith.constant 0 : index
    %c0_2 = arith.constant 0 : index
    %c0_3 = arith.constant 0 : index
    %c0_4 = arith.constant 0 : index
    %1 = vector.load %arg2[%c0_1, %c0_2, %c0_3, %c0_4] : memref<2x4x3x16xf32, #tpu.memory_space<vmem>>, vector<2x4x1x16xf32>
    %2 = vector.shape_cast %1 : vector<2x4x1x16xf32> to vector<2x4x16xf32>
    %3 = vector.extract_strided_slice %0 {offsets = [0, 0], sizes = [4, 1], strides = [1, 1]} : vector<4x3xf32> to vector<4x1xf32>
    %4 = vector.shape_cast %3 : vector<4x1xf32> to vector<1x4x1xf32>
    %5 = vector.broadcast %4 : vector<1x4x1xf32> to vector<2x4x16xf32>
    %6 = arith.mulf %2, %5 : vector<2x4x16xf32>
    %c0_5 = arith.constant 0 : index
    %c0_6 = arith.constant 0 : index
    %c1 = arith.constant 1 : index
    %c0_7 = arith.constant 0 : index
    %7 = vector.load %arg2[%c0_5, %c0_6, %c1, %c0_7] : memref<2x4x3x16xf32, #tpu.memory_space<vmem>>, vector<2x4x1x16xf32>
    %8 = vector.shape_cast %7 : vector<2x4x1x16xf32> to vector<2x4x16xf32>
    %9 = vector.extract_strided_slice %0 {offsets = [0, 1], sizes = [4, 1], strides = [1, 1]} : vector<4x3xf32> to vector<4x1xf32>
    %10 = vector.shape_cast %9 : vector<4x1xf32> to vector<1x4x1xf32>
    %11 = vector.broadcast %10 : vector<1x4x1xf32> to vector<2x4x16xf32>
    %12 = arith.mulf %8, %11 : vector<2x4x16xf32>
    %13 = arith.addf %6, %12 : vector<2x4x16xf32>
    %c0_8 = arith.constant 0 : index
    %c0_9 = arith.constant 0 : index
    %c2 = arith.constant 2 : index
    %c0_10 = arith.constant 0 : index
    %14 = vector.load %arg2[%c0_8, %c0_9, %c2, %c0_10] : memref<2x4x3x16xf32, #tpu.memory_space<vmem>>, vector<2x4x1x16xf32>
    %15 = vector.shape_cast %14 : vector<2x4x1x16xf32> to vector<2x4x16xf32>
    %16 = vector.extract_strided_slice %0 {offsets = [0, 2], sizes = [4, 1], strides = [1, 1]} : vector<4x3xf32> to vector<4x1xf32>
    %17 = vector.shape_cast %16 : vector<4x1xf32> to vector<1x4x1xf32>
    %18 = vector.broadcast %17 : vector<1x4x1xf32> to vector<2x4x16xf32>
    %19 = arith.mulf %15, %18 : vector<2x4x16xf32>
    %20 = arith.addf %13, %19 : vector<2x4x16xf32>
    %c0_11 = arith.constant 0 : index
    %c0_12 = arith.constant 0 : index
    %21 = vector.load %arg4[%c0_11, %c0_12] : memref<4x1xf32, #tpu.memory_space<vmem>>, vector<4x1xf32>
    %22 = vector.shape_cast %21 : vector<4x1xf32> to vector<1x4x1xf32>
    %23 = vector.broadcast %22 : vector<1x4x1xf32> to vector<2x4x16xf32>
    %24 = arith.addf %20, %23 : vector<2x4x16xf32>
    %cst = arith.constant 0.000000e+00 : f32
    %cst_13 = arith.constant 1.000000e+00 : f32
    %25 = vector.broadcast %cst : f32 to vector<2x4x16xf32>
    %26 = arith.maximumf %25, %24 : vector<2x4x16xf32>
    %27 = vector.broadcast %cst_13 : f32 to vector<2x4x16xf32>
    %28 = arith.minimumf %27, %26 : vector<2x4x16xf32>
    %c0_14 = arith.constant 0 : index
    %c0_15 = arith.constant 0 : index
    %c0_16 = arith.constant 0 : index
    %29 = vector.load %arg5[%c0_14, %c0_15, %c0_16] : memref<2x4x16xf32, #tpu.memory_space<vmem>>, vector<2x4x16xf32>
    tpu.vector_store %arg5[%c0_14, %c0_15, %c0_16], %28 {strides = array<i32>} : memref<2x4x16xf32, #tpu.memory_space<vmem>>, vector<2x4x16xf32>,
    return
  }
  func.func @transform_0(%arg0: i32, %arg1: i32) -> (i32, i32, i32, i32) {
    %c0_i32 = arith.constant 0 : i32
    %c0_i32_0 = arith.constant 0 : i32
    %c0_i32_1 = arith.constant 0 : i32
    return %arg0, %c0_i32, %c0_i32_0, %arg1 : i32, i32, i32, i32
  }
  func.func @transform_1(%arg0: i32, %arg1: i32) -> (i32, i32) {
    %c0_i32 = arith.constant 0 : i32
    %c0_i32_0 = arith.constant 0 : i32
    %c0_i32_1 = arith.constant 0 : i32
    return %c0_i32, %c0_i32_0 : i32, i32
  }
  func.func @transform_2(%arg0: i32, %arg1: i32) -> (i32, i32) {
    %c0_i32 = arith.constant 0 : i32
    %c0_i32_0 = arith.constant 0 : i32
    %c0_i32_1 = arith.constant 0 : i32
    return %c0_i32, %c0_i32_0 : i32, i32
  }
  func.func @transform_3(%arg0: i32, %arg1: i32) -> (i32, i32, i32) {
    %c0_i32 = arith.constant 0 : i32
    %c0_i32_0 = arith.constant 0 : i32
    return %arg0, %c0_i32, %arg1 : i32, i32, i32
  }
}

</mosaic_0001>

<bundles_post_ra>
// kernel: tpu_custom_call.1
= control target key start
LH: loop header
LB: loop body
LE: loop exit
PB: predicated region body
PF: predicated region fallthrough
CT: control target
= control target key end

     0   :  { %v230_v1 = vmov 0   ;;  %v231_v2 = vmov 2   ;;  %s341_s0 = inlined_call_operand.vmem [shape: f32[2,4,3,16], index: 0, kind: input, shape index: {}]   ;;  %s342_s1 = inlined_call_operand.vmem [shape: f32[4,3], index: 1, kind: input, shape index: {}]   ;;  %s343_s2 = inlined_call_operand.vmem [shape: f32[4,1], index: 2, kind: input, shape index: {}]   ;;  %s344_s3 = inlined_call_operand.hbm [shape: f32[2,4,16], index: 3, kind: output, shape index: {}]  }
   0x1   :  { %v15_v0 = vld [vmem:[%s342_s1] sm:$0xf]  ;;  %199 = vset.pattern.permute.xlu0 %v230_v1  ;;  %201 = vset.pattern.permute.xlu1 %v231_v2 }
   0x2   :  { %26 = vperm.xlu0 %199, %v15_v0   ;;  %86 = vperm.xlu1 %201, %v15_v0  }
   0x3   :  { %8 = vsyncpa [#allocation3], 0  ;;  %v111_v3 = vld [vmem:[%s343_s2] sm:$0xf]  ;;  %v232_v4 = vmov 1   ;;  %vm156_vm0 = vcmask 1041409  }
   0x4   :  { %v16_v7 = vld [vmem:[%s341_s0] sm:$0x1]  ;;  %v17_v8 = vld [vmem:[%s341_s0 + $0x4] sm:$0x1]  ;;  %v18_v9 = vld [vmem:[%s341_s0 + $0x8] sm:$0x1] }
   0x5   :  { %v20_v10 = vld [vmem:[%s341_s0 + $0x10] sm:$0x1]  ;;  %v19_v11 = vld [vmem:[%s341_s0 + $0xc] sm:$0x1]  ;;  %v21_v12 = vld [vmem:[%s341_s0 + $0x14] sm:$0x1] }
   0x6   :  { %v22_v13 = vld [vmem:[%s341_s0 + $0x18] sm:$0x1]  ;;  %v23_v16 = vld [vmem:[%s341_s0 + $0x1c] sm:$0x1]  ;;  %v77_v18 = vld [vmem:[%s341_s0 + $0x2] sm:$0x1] }
   0x7   :  { %v78_v19 = vld [vmem:[%s341_s0 + $0x6] sm:$0x1]  ;;  %v79_v23 = vld [vmem:[%s341_s0 + $0xa] sm:$0x1]  ;;  %v80_v24 = vld [vmem:[%s341_s0 + $0xe] sm:$0x1] }
   0x8   :  { %v81_v25 = vld [vmem:[%s341_s0 + $0x12] sm:$0x1]  ;;  %v82_v30 = vld [vmem:[%s341_s0 + $0x16] sm:$0x1]  ;;  %v83_v31 = vld [vmem:[%s341_s0 + $0x1a] sm:$0x1] }
   0x9   :  { %v84_v32 = vld [vmem:[%s341_s0 + $0x1e] sm:$0x1]  ;;  %v43_v37 = vld [vmem:[%s341_s0 + $0x1] sm:$0x1]  ;;  %v44_v42 = vld [vmem:[%s341_s0 + $0x5] sm:$0x1] }
   0xa   :  { %200 = vset.pattern.permute.xlu0 %v232_v4  ;;  %202 = vset.pattern.permute.xlu1 %v230_v1  ;;  %v45_v43 = vld [vmem:[%s341_s0 + $0x9] sm:$0x1]  ;;  %v47_v44 = vld [vmem:[%s341_s0 + $0x11] sm:$0x1]  ;;  %v46_v49 = vld [vmem:[%s341_s0 + $0xd] sm:$0x1] }
   0xb   :  { %52 = vperm.xlu0 %200, %v15_v0   ;;  %114 = vperm.xlu1 %202, %v111_v3   ;;  %v48_v50 = vld [vmem:[%s341_s0 + $0x15] sm:$0x1]  ;;  %v49_v51 = vld [vmem:[%s341_s0 + $0x19] sm:$0x1]  ;;  %v50_v54 = vld [vmem:[%s341_s0 + $0x1d] sm:$0x1] }
   0xc   :  { %vm159_vm1 = vcmask 1042434   ;;  %s233_s0 = smov [#allocation2]   ;;  %s181_s9 = sshll.u32 %s344_s3, 4  ;;  %vm162_vm2 = vcmask 1043459   ;;  %vm172_vm3 = vcmask 125952   ;;  %s182_s9 = int_to_ptr.hbm [resolvable:$true] %s181_s9 }
   0xd   :  { %s179_s6 = sshll.u32 %s233_s0, 4  ;;  %s234_s3 = smov 64   ;;  %s180_s6 = int_to_ptr.vmem [resolvable:$true] %s179_s6 }
   0xe   :  { %s235_s10 = smov 4  }
  0x13   :  { %203 = vset.pattern.permute.xlu0 %v230_v1 }
  0x74   :  { %v27_v5 = vpop.permute.xlu0 %26  ;;  %v87_v6 = vpop.permute.xlu1 %86 }
  0x75   :  { %v28_v14 = vrot.slane %v27_v5, 1  ;;  %v29_v15 = vrot.slane %v27_v5, 2  ;;  %v30_v17 = vrot.slane %v27_v5, 3  ;;  %v88_v20 = vrot.slane %v87_v6, 1 }
  0x76   :  { %v89_v21 = vrot.slane %v87_v6, 2  ;;  %v90_v22 = vrot.slane %v87_v6, 3  ;;  %v35_v26 = vmul.f32 %v27_v5, %v16_v7  ;;  %v39_v29 = vmul.f32 %v27_v5, %v20_v10 }
  0x77   :  { %v36_v27 = vmul.f32 %v28_v14, %v17_v8  ;;  %v37_v28 = vmul.f32 %v29_v15, %v18_v9  ;;  %v38_v33 = vmul.f32 %v30_v17, %v19_v11  ;;  %v40_v34 = vmul.f32 %v28_v14, %v21_v12 }
  0x78   :  { %v41_v35 = vmul.f32 %v29_v15, %v22_v13  ;;  %v42_v36 = vmul.f32 %v30_v17, %v23_v16  ;;  %v95_v38 = vmul.f32 %v87_v6, %v77_v18  ;;  %v96_v39 = vmul.f32 %v88_v20, %v78_v19 }
  0x79   :  { %v97_v40 = vmul.f32 %v89_v21, %v79_v23  ;;  %v98_v41 = vmul.f32 %v90_v22, %v80_v24  ;;  %v99_v45 = vmul.f32 %v87_v6, %v81_v25  ;;  %v100_v46 = vmul.f32 %v88_v20, %v82_v30 }
  0x7a   :  { %v101_v47 = vmul.f32 %v89_v21, %v83_v31  ;;  %v102_v48 = vmul.f32 %v90_v22, %v84_v32 }
  0x7d   :  { %v53_v52 = vpop.permute.xlu0 %52  ;;  %v115_v53 = vpop.permute.xlu1 %114 }
  0x7e   :  { %v54_v55 = vrot.slane %v53_v52, 1  ;;  %v55_v56 = vrot.slane %v53_v52, 2  ;;  %v56_v57 = vrot.slane %v53_v52, 3  ;;  %v61_v58 = vmul.f32 %v53_v52, %v43_v37 }
  0x7f   :  { %v65_v59 = vmul.f32 %v53_v52, %v47_v44  ;;  %v116_v60 = vrot.slane %v115_v53, 1  ;;  %v117_v61 = vrot.slane %v115_v53, 2  ;;  %v118_v62 = vrot.slane %v115_v53, 3 }
  0x80   :  { %v62_v63 = vmul.f32 %v54_v55, %v44_v42  ;;  %v63_v0 = vmul.f32 %v55_v56, %v45_v43  ;;  %v64_v1 = vmul.f32 %v56_v57, %v46_v49  ;;  %v66_v2 = vmul.f32 %v54_v55, %v48_v50 }
  0x81   :  { %v67_v3 = vmul.f32 %v55_v56, %v49_v51  ;;  %v68_v4 = vmul.f32 %v56_v57, %v50_v54  ;;  %v69_v5 = vadd.f32 %v61_v58, %v35_v26  ;;  %v73_v6 = vadd.f32 %v65_v59, %v39_v29 }
  0x82   :  { %v70_v7 = vadd.f32 %v62_v63, %v36_v27  ;;  %v71_v8 = vadd.f32 %v63_v0, %v37_v28  ;;  %v72_v9 = vadd.f32 %v64_v1, %v38_v33  ;;  %v74_v10 = vadd.f32 %v66_v2, %v40_v34 }
  0x83   :  { %v75_v11 = vadd.f32 %v67_v3, %v41_v35  ;;  %v76_v12 = vadd.f32 %v68_v4, %v42_v36  ;;  %v103_v13 = vadd.f32 %v95_v38, %v69_v5  ;;  %v107_v14 = vadd.f32 %v99_v45, %v73_v6 }
  0x84   :  { %v104_v15 = vadd.f32 %v96_v39, %v70_v7  ;;  %v105_v16 = vadd.f32 %v97_v40, %v71_v8  ;;  %v106_v17 = vadd.f32 %v98_v41, %v72_v9  ;;  %v108_v18 = vadd.f32 %v100_v46, %v74_v10 }
  0x85   :  { %v109_v19 = vadd.f32 %v101_v47, %v75_v11  ;;  %v110_v20 = vadd.f32 %v102_v48, %v76_v12  ;;  %v123_v21 = vadd.f32 %v115_v53, %v103_v13  ;;  %v127_v22 = vadd.f32 %v115_v53, %v107_v14 }
  0x86   :  { %v124_v23 = vadd.f32 %v116_v60, %v104_v15  ;;  %v125_v24 = vadd.f32 %v117_v61, %v105_v16  ;;  %v126_v25 = vadd.f32 %v118_v62, %v106_v17  ;;  %v128_v26 = vadd.f32 %v116_v60, %v108_v18 }
  0x87   :  { %v129_v27 = vadd.f32 %v117_v61, %v109_v19  ;;  %v130_v28 = vadd.f32 %v118_v62, %v110_v20  ;;  %v131_v29 = vmax.f32 %v123_v21, 0.0  ;;  %v135_v30 = vmax.f32 %v127_v22, 0.0 }
  0x88   :  { %v132_v31 = vmax.f32 %v124_v23, 0.0  ;;  %v133_v32 = vmax.f32 %v125_v24, 0.0  ;;  %v134_v33 = vmax.f32 %v126_v25, 0.0  ;;  %v136_v34 = vmax.f32 %v128_v26, 0.0 }
  0x89   :  { %v137_v35 = vmax.f32 %v129_v27, 0.0  ;;  %v138_v36 = vmax.f32 %v130_v28, 0.0  ;;  %v139_v41 = vmin.f32 %v131_v29, 1.0  ;;  %v143_v44 = vmin.f32 %v135_v30, 1.0 }
  0x8a   :  { %v140_v37 = vmin.f32 %v132_v31, 1.0  ;;  %v141_v38 = vmin.f32 %v133_v32, 1.0  ;;  %v142_v39 = vmin.f32 %v134_v33, 1.0  ;;  %v144_v40 = vmin.f32 %v136_v34, 1.0 }
  0x8b   :  { %v145_v42 = vmin.f32 %v137_v35, 1.0  ;;  %v146_v43 = vmin.f32 %v138_v36, 1.0 }
  0x8c   :  { %v155_v45 = vrot.slane %v140_v37, 7  ;;  %v158_v46 = vrot.slane %v141_v38, 6  ;;  %v164_v47 = vrot.slane %v144_v40, 7  ;;  %v161_v50 = vrot.slane %v142_v39, 5 }
  0x8d   :  { %v166_v48 = vrot.slane %v145_v42, 6  ;;  %v168_v52 = vrot.slane %v146_v43, 5 }
  0x8e   :  { %v157_v49 = vsel %vm156_vm0, %v155_v45, %v139_v41  ;;  %v165_v51 = vsel %vm156_vm0, %v164_v47, %v143_v44 }
  0x8f   :  { %v160_v53 = vsel %vm159_vm1, %v158_v46, %v157_v49  ;;  %v167_v54 = vsel %vm159_vm1, %v166_v48, %v165_v51 }
  0x90   :  { %v163_v55 = vsel %vm162_vm2, %v161_v50, %v160_v53  ;;  %v169_v56 = vsel %vm162_vm2, %v168_v52, %v167_v54 }
  0x91   :  { %173 = vst.msk [vmem:[#allocation2] sm:$0xf] %vm172_vm3, %v163_v55 }
  0x92   :  { %174 = vst.msk [vmem:[#allocation2 + $0x4] sm:$0xf] %vm172_vm3, %v169_v56 }
  0x93   :  { %187 = dma.vmem_to_hbm [thread:$0]  %s180_s6, 128, %s182_s9, [#allocation3], %s234_s3, %s234_s3, %s235_s10  }
  0x94   :  { %228 = dma.done.wait [#allocation3], 128  }
  0x95   :  { %229 = vsyncadd [#allocation3], 4294967168 }
  0x96   :  { %192 = vsyncpa [#allocation3], 1 }

</bundles_post_ra>
